<compile_context>
chip_gen: v7x
topology: tpu7x:2x2x1
jax: 0.10.0
libtpu: 0.0.40
codegen_flags: <defaults>
</compile_context>

<pallas_src>
import functools

import jax
import jax.numpy as jnp
from jax import lax
from jax.experimental import pallas as pl
from jax.experimental.pallas import tpu as pltpu

EPS = 1e-5
_VMEM = pl.BlockSpec(memory_space=pltpu.MemorySpace.VMEM)


def _decoder_block_kernel(x_ref, w1_ref, we2_ref, wo2_ref, w3_ref,
                          g1_ref, b1_ref, g2_ref, b2_ref, g3_ref, b3_ref,
                          ye_ref, yo_ref, *, seq_len, mxu_dtype):
    L = seq_len
    f32 = jnp.float32
    x = x_ref[...]                                   # (Cin, N*L): channels in sublanes, positions in lanes
    NL = x.shape[1]

    # Seam masks over the flattened (n, l) lane axis: recreate the conv zero padding at l==0 / l==L-1
    # of every per-batch segment (and kill any cross-batch leakage of the shifted taps).
    pos = lax.broadcasted_iota(jnp.int32, (1, NL), 1) % L
    not_first = pos != 0
    not_last = pos != (L - 1)

    def shift_prev(a):                               # a[., n, l] -> a[., n, l-1], zero at l == 0
        s = jnp.concatenate([jnp.zeros((a.shape[0], 1), a.dtype), a[:, :NL - 1]], axis=1)
        return jnp.where(not_first, s, 0.0)

    def shift_next(a):                               # a[., n, l] -> a[., n, l+1], zero at l == L-1
        s = jnp.concatenate([a[:, 1:], jnp.zeros((a.shape[0], 1), a.dtype)], axis=1)
        return jnp.where(not_last, s, 0.0)

    def mm(w, a):                                    # single 2-D MXU matmul: (O, J) @ (J, N*L)
        return jnp.dot(w.astype(mxu_dtype), a.astype(mxu_dtype),
                       preferred_element_type=f32)

    def bn_relu(parts, gamma, beta):
        # BatchNorm1d (training-mode batch statistics, biased variance) + ReLU.
        # `parts` is a list of (C, N*L) arrays forming ONE BN group (joint statistics).
        cnt = float(len(parts) * NL)
        s = parts[0].sum(axis=1, keepdims=True)
        for p in parts[1:]:
            s = s + p.sum(axis=1, keepdims=True)
        mean = s / cnt
        centered = [p - mean for p in parts]
        v = (centered[0] * centered[0]).sum(axis=1, keepdims=True)
        for d in centered[1:]:
            v = v + (d * d).sum(axis=1, keepdims=True)
        scale = lax.rsqrt(v / cnt + EPS) * gamma     # (C, 1)
        return [jnp.maximum(d * scale + beta, 0.0) for d in centered]

    # ---- stage 1: Conv1d(Cin -> Cmid, k=3, pad=1) + BN + ReLU ---------------------------------
    xcat = jnp.concatenate([shift_prev(x), x, shift_next(x)], axis=0)          # (3*Cin, N*L)
    (h1,) = bn_relu([mm(w1_ref[...], xcat)], g1_ref[...], b1_ref[...])         # (Cmid, N*L)

    # ---- stage 2: ConvTranspose1d(Cmid -> Cmid, k=4, s=2, pad=1) + BN + ReLU ------------------
    # polyphase: even[m] = Wt1 h1[m] + Wt3 h1[m-1] ;  odd[m] = Wt2 h1[m] + Wt0 h1[m+1]
    even_pre = mm(we2_ref[...], jnp.concatenate([h1, shift_prev(h1)], axis=0))
    odd_pre = mm(wo2_ref[...], jnp.concatenate([h1, shift_next(h1)], axis=0))
    even, odd = bn_relu([even_pre, odd_pre], g2_ref[...], b2_ref[...])         # joint BN over length-2L signal

    # ---- stage 3: Conv1d(Cmid -> NF, k=3, pad=1) on the interleaved length-2L signal ----------
    # polyphase: y[2m]   = W3_0 odd[m-1] + W3_1 even[m] + W3_2 odd[m]
    #            y[2m+1] = W3_0 even[m]  + W3_1 odd[m]  + W3_2 even[m+1]
    ye_pre = mm(w3_ref[...], jnp.concatenate([shift_prev(odd), even, odd], axis=0))
    yo_pre = mm(w3_ref[...], jnp.concatenate([even, odd, shift_next(even)], axis=0))
    ye, yo = bn_relu([ye_pre, yo_pre], g3_ref[...], b3_ref[...])

    ye_ref[...] = ye                                 # (NF, N*L) lane-dense phase slabs; the stride-2
    yo_ref[...] = yo                                 # interleave is layout plumbing in the wrapper


def decoder_block(x_ncl, params, *, mxu_dtype=jnp.float32):
    """Forward of the PyTorch DecoderBlock (kernel_size=4 branch, conv_stride=2).

    x_ncl: (N, C_in, L) float32 in PyTorch NCL layout.  Returns (N, n_filters, 2*L).
    BatchNorm uses batch statistics (train-mode forward of a fresh module), eps=1e-5.
    Set mxu_dtype=jnp.bfloat16 to feed the MXU bf16 operands (f32 accumulation) per the
    v6e/v7x perf recommendation; expect ~1e-2-level deviations vs. the f32 reference.
    """
    N, Cin, L = x_ncl.shape
    NF = params["w3f"].shape[0]
    NL = N * L

    # Input layout plumbing only: channels -> sublanes, flattened (n, l) -> lanes.
    x2 = jnp.transpose(x_ncl.astype(jnp.float32), (1, 0, 2)).reshape(Cin, NL)

    def cvec(v):
        return v.reshape(-1, 1).astype(jnp.float32)

    kernel = functools.partial(_decoder_block_kernel, seq_len=L, mxu_dtype=mxu_dtype)
    ye, yo = pl.pallas_call(
        kernel,
        out_shape=(jax.ShapeDtypeStruct((NF, NL), jnp.float32),
                   jax.ShapeDtypeStruct((NF, NL), jnp.float32)),
        in_specs=[_VMEM] * 11,
        out_specs=(_VMEM, _VMEM),
    )(x2, params["w1f"], params["we2"], params["wo2"], params["w3f"],
      cvec(params["g1"]), cvec(params["be1"]),
      cvec(params["g2"]), cvec(params["be2"]),
      cvec(params["g3"]), cvec(params["be3"]))

    # Stride-2 interleave of the even/odd phases + NCL output layout (pure XLA layout plumbing).
    y = jnp.stack([ye.reshape(NF, N, L), yo.reshape(NF, N, L)], axis=-1)       # (NF, N, L, 2)
    return jnp.transpose(y.reshape(NF, N, 2 * L), (1, 0, 2))                   # (N, NF, 2*L)


def make_params(key, in_channels, n_filters):
    cmid = in_channels // 4
    ks = jax.random.split(key, 3)
    # PyTorch layouts: Conv1d weight (O, I, K); ConvTranspose1d weight (I, O, K).
    w1 = jax.random.normal(ks[0], (cmid, in_channels, 3), jnp.float32) * 0.1
    wt = jax.random.normal(ks[1], (cmid, cmid, 4), jnp.float32) * 0.1
    w3 = jax.random.normal(ks[2], (n_filters, cmid, 3), jnp.float32) * 0.1
    # Conv / conv-transpose biases are intentionally omitted: each is a per-channel constant that
    # cancels exactly under the batch-statistic BatchNorm that immediately follows, so the forward
    # output is identical.
    wt_k = jnp.transpose(wt, (2, 1, 0))                      # (K, O, I): wt_k[k, o, i] = wt[i, o, k]
    return {
        # Conv1d taps flattened for im2col: W[o, k*Cin + i] = w[o, i, k]
        "w1f": jnp.transpose(w1, (0, 2, 1)).reshape(cmid, 3 * in_channels),
        # ConvTranspose taps regrouped for the even / odd output phases
        "we2": jnp.concatenate([wt_k[1], wt_k[3]], axis=1),  # (cmid, 2*cmid)
        "wo2": jnp.concatenate([wt_k[2], wt_k[0]], axis=1),  # (cmid, 2*cmid)
        "w3f": jnp.transpose(w3, (0, 2, 1)).reshape(n_filters, 3 * cmid),
        # fresh BatchNorm1d: gamma=1, beta=0
        "g1": jnp.ones((cmid,), jnp.float32), "be1": jnp.zeros((cmid,), jnp.float32),
        "g2": jnp.ones((cmid,), jnp.float32), "be2": jnp.zeros((cmid,), jnp.float32),
        "g3": jnp.ones((n_filters,), jnp.float32), "be3": jnp.zeros((n_filters,), jnp.float32),
    }


if __name__ == "__main__":
    # small shapes consistent with the module: in_channels=32 (mid=8), n_filters=16
    N, C_IN, L, N_FILT = 2, 32, 16, 16
    key = jax.random.PRNGKey(0)
    kx, kp = jax.random.split(key)
    x = jax.random.normal(kx, (N, C_IN, L), jnp.float32)      # PyTorch NCL input
    params = make_params(kp, C_IN, N_FILT)

    out = jax.block_until_ready(jax.jit(decoder_block)(x, params))

    assert out.shape == (N, N_FILT, 2 * L), out.shape         # stride-2 transpose conv doubles L
    assert bool(jnp.all(jnp.isfinite(out)))
    assert bool(jnp.all(out >= 0.0))                          # final ReLU
    print("KERNEL_OK")
</pallas_src>

<mosaic_0001>
module attributes {stable_mosaic.version = 11 : i64} {
  func.func @_decoder_block_kernel(%arg0: memref<32x32xf32, #tpu.memory_space<vmem>>, %arg1: memref<8x96xf32, #tpu.memory_space<vmem>>, %arg2: memref<8x16xf32, #tpu.memory_space<vmem>>, %arg3: memref<8x16xf32, #tpu.memory_space<vmem>>, %arg4: memref<16x24xf32, #tpu.memory_space<vmem>>, %arg5: memref<8x1xf32, #tpu.memory_space<vmem>>, %arg6: memref<8x1xf32, #tpu.memory_space<vmem>>, %arg7: memref<8x1xf32, #tpu.memory_space<vmem>>, %arg8: memref<8x1xf32, #tpu.memory_space<vmem>>, %arg9: memref<16x1xf32, #tpu.memory_space<vmem>>, %arg10: memref<16x1xf32, #tpu.memory_space<vmem>>, %arg11: memref<16x32xf32, #tpu.memory_space<vmem>>, %arg12: memref<16x32xf32, #tpu.memory_space<vmem>>) attributes {dimension_semantics = [], scalar_prefetch = 0 : i64, scratch_operands = 0 : i64, tpu.core_type = #tpu.core_type<tc>} {
    %c0 = arith.constant 0 : index
    %c0_0 = arith.constant 0 : index
    %0 = vector.load %arg0[%c0, %c0_0] : memref<32x32xf32, #tpu.memory_space<vmem>>, vector<32x32xf32>
    %1 = tpu.iota {dimensions = array<i32: 1>} : vector<1x32xi32>
    %c16_i32 = arith.constant 16 : i32
    %c0_i32 = arith.constant 0 : i32
    %2 = arith.cmpi eq, %c16_i32, %c0_i32 : i32
    %c1_i32 = arith.constant 1 : i32
    %3 = arith.select %2, %c1_i32, %c16_i32 : i32
    %4 = vector.broadcast %3 : i32 to vector<1x32xi32>
    %5 = arith.remsi %1, %4 : vector<1x32xi32>
    %c0_i32_1 = arith.constant 0 : i32
    %6 = vector.broadcast %c0_i32_1 : i32 to vector<1x32xi32>
    %7 = arith.cmpi ne, %5, %6 : vector<1x32xi32>
    %c0_i32_2 = arith.constant 0 : i32
    %8 = vector.broadcast %c0_i32_2 : i32 to vector<1x32xi32>
    %9 = arith.cmpi slt, %5, %8 : vector<1x32xi32>
    %c0_i32_3 = arith.constant 0 : i32
    %10 = arith.cmpi slt, %3, %c0_i32_3 : i32
    %11 = vector.broadcast %10 : i1 to vector<1x32xi1>
    %12 = vector.broadcast %11 : vector<1x32xi1> to vector<1x32xi1>
    %13 = arith.xori %9, %12 : vector<1x32xi1>
    %14 = arith.andi %13, %7 : vector<1x32xi1>
    %15 = vector.broadcast %3 : i32 to vector<1x32xi32>
    %16 = arith.addi %5, %15 : vector<1x32xi32>
    %17 = arith.select %14, %16, %5 : vector<1x32xi1>, vector<1x32xi32>
    %c0_i32_4 = arith.constant 0 : i32
    %18 = vector.broadcast %c0_i32_4 : i32 to vector<1x32xi32>
    %19 = arith.cmpi ne, %17, %18 : vector<1x32xi32>
    %c15_i32 = arith.constant 15 : i32
    %20 = vector.broadcast %c15_i32 : i32 to vector<1x32xi32>
    %21 = arith.cmpi ne, %17, %20 : vector<1x32xi32>
    %cst = arith.constant 0.000000e+00 : f32
    %22 = vector.broadcast %cst : f32 to vector<32x1xf32>
    %23 = vector.extract_strided_slice %0 {offsets = [0, 0], sizes = [32, 31], strides = [1, 1]} : vector<32x32xf32> to vector<32x31xf32>
    %24 = tpu.concatenate %22, %23 in 1 : vector<32x1xf32>, vector<32x31xf32> -> vector<32x32xf32>
    %cst_5 = arith.constant 0.000000e+00 : f32
    %25 = vector.shape_cast %19 : vector<1x32xi1> to vector<1x32xi1>
    %26 = vector.broadcast %25 : vector<1x32xi1> to vector<32x32xi1>
    %27 = vector.broadcast %cst_5 : f32 to vector<32x32xf32>
    %28 = arith.select %26, %24, %27 : vector<32x32xi1>, vector<32x32xf32>
    %29 = vector.extract_strided_slice %0 {offsets = [0, 1], sizes = [32, 31], strides = [1, 1]} : vector<32x32xf32> to vector<32x31xf32>
    %cst_6 = arith.constant 0.000000e+00 : f32
    %30 = vector.broadcast %cst_6 : f32 to vector<32x1xf32>
    %31 = tpu.concatenate %29, %30 in 1 : vector<32x31xf32>, vector<32x1xf32> -> vector<32x32xf32>
    %cst_7 = arith.constant 0.000000e+00 : f32
    %32 = vector.shape_cast %21 : vector<1x32xi1> to vector<1x32xi1>
    %33 = vector.broadcast %32 : vector<1x32xi1> to vector<32x32xi1>
    %34 = vector.broadcast %cst_7 : f32 to vector<32x32xf32>
    %35 = arith.select %33, %31, %34 : vector<32x32xi1>, vector<32x32xf32>
    %36 = tpu.concatenate %28, %0, %35 in 0 : vector<32x32xf32>, vector<32x32xf32>, vector<32x32xf32> -> vector<96x32xf32>
    %c0_8 = arith.constant 0 : index
    %c0_9 = arith.constant 0 : index
    %37 = vector.load %arg1[%c0_8, %c0_9] : memref<8x96xf32, #tpu.memory_space<vmem>>, vector<8x96xf32>
    %cst_10 = arith.constant dense<0.000000e+00> : vector<8x32xf32>
    %38 = tpu.matmul %37, %36, %cst_10 {dimension_numbers = #tpu.dot_dimension_numbers<[1], [0], [0], [1], [0, 0, 1, 1], [], []>} : vector<8x96xf32>, vector<96x32xf32>, vector<8x32xf32> -> vector<8x32xf32>
    %c0_11 = arith.constant 0 : index
    %c0_12 = arith.constant 0 : index
    %39 = vector.load %arg5[%c0_11, %c0_12] : memref<8x1xf32, #tpu.memory_space<vmem>>, vector<8x1xf32>
    %c0_13 = arith.constant 0 : index
    %c0_14 = arith.constant 0 : index
    %40 = vector.load %arg6[%c0_13, %c0_14] : memref<8x1xf32, #tpu.memory_space<vmem>>, vector<8x1xf32>
    %cst_15 = arith.constant dense<0.000000e+00> : vector<8xf32>
    %41 = vector.multi_reduction <add>, %38, %cst_15 [1] : vector<8x32xf32> to vector<8xf32>
    %42 = vector.shape_cast %41 : vector<8xf32> to vector<8x1xf32>
    %cst_16 = arith.constant 3.200000e+01 : f32
    %43 = vector.broadcast %cst_16 : f32 to vector<8x1xf32>
    %44 = arith.divf %42, %43 : vector<8x1xf32>
    %45 = vector.broadcast %44 : vector<8x1xf32> to vector<8x32xf32>
    %46 = arith.subf %38, %45 : vector<8x32xf32>
    %47 = arith.mulf %46, %46 : vector<8x32xf32>
    %cst_17 = arith.constant dense<0.000000e+00> : vector<8xf32>
    %48 = vector.multi_reduction <add>, %47, %cst_17 [1] : vector<8x32xf32> to vector<8xf32>
    %49 = vector.shape_cast %48 : vector<8xf32> to vector<8x1xf32>
    %cst_18 = arith.constant 3.200000e+01 : f32
    %50 = vector.broadcast %cst_18 : f32 to vector<8x1xf32>
    %51 = arith.divf %49, %50 : vector<8x1xf32>
    %cst_19 = arith.constant 9.99999974E-6 : f32
    %52 = vector.broadcast %cst_19 : f32 to vector<8x1xf32>
    %53 = arith.addf %51, %52 : vector<8x1xf32>
    %54 = math.rsqrt %53 : vector<8x1xf32>
    %55 = arith.mulf %54, %39 : vector<8x1xf32>
    %56 = vector.broadcast %55 : vector<8x1xf32> to vector<8x32xf32>
    %57 = arith.mulf %46, %56 : vector<8x32xf32>
    %58 = vector.broadcast %40 : vector<8x1xf32> to vector<8x32xf32>
    %59 = arith.addf %57, %58 : vector<8x32xf32>
    %cst_20 = arith.constant 0.000000e+00 : f32
    %60 = vector.broadcast %cst_20 : f32 to vector<8x32xf32>
    %61 = arith.maximumf %59, %60 : vector<8x32xf32>
    %c0_21 = arith.constant 0 : index
    %c0_22 = arith.constant 0 : index
    %62 = vector.load %arg2[%c0_21, %c0_22] : memref<8x16xf32, #tpu.memory_space<vmem>>, vector<8x16xf32>
    %cst_23 = arith.constant 0.000000e+00 : f32
    %63 = vector.broadcast %cst_23 : f32 to vector<8x1xf32>
    %64 = vector.extract_strided_slice %61 {offsets = [0, 0], sizes = [8, 31], strides = [1, 1]} : vector<8x32xf32> to vector<8x31xf32>
    %65 = tpu.concatenate %63, %64 in 1 : vector<8x1xf32>, vector<8x31xf32> -> vector<8x32xf32>
    %cst_24 = arith.constant 0.000000e+00 : f32
    %66 = vector.shape_cast %19 : vector<1x32xi1> to vector<1x32xi1>
    %67 = vector.broadcast %66 : vector<1x32xi1> to vector<8x32xi1>
    %68 = vector.broadcast %cst_24 : f32 to vector<8x32xf32>
    %69 = arith.select %67, %65, %68 : vector<8x32xi1>, vector<8x32xf32>
    %70 = tpu.concatenate %61, %69 in 0 : vector<8x32xf32>, vector<8x32xf32> -> vector<16x32xf32>
    %cst_25 = arith.constant dense<0.000000e+00> : vector<8x32xf32>
    %71 = tpu.matmul %62, %70, %cst_25 {dimension_numbers = #tpu.dot_dimension_numbers<[1], [0], [0], [1], [0, 0, 1, 1], [], []>} : vector<8x16xf32>, vector<16x32xf32>, vector<8x32xf32> -> vector<8x32xf32>
    %c0_26 = arith.constant 0 : index
    %c0_27 = arith.constant 0 : index
    %72 = vector.load %arg3[%c0_26, %c0_27] : memref<8x16xf32, #tpu.memory_space<vmem>>, vector<8x16xf32>
    %73 = vector.extract_strided_slice %61 {offsets = [0, 1], sizes = [8, 31], strides = [1, 1]} : vector<8x32xf32> to vector<8x31xf32>
    %cst_28 = arith.constant 0.000000e+00 : f32
    %74 = vector.broadcast %cst_28 : f32 to vector<8x1xf32>
    %75 = tpu.concatenate %73, %74 in 1 : vector<8x31xf32>, vector<8x1xf32> -> vector<8x32xf32>
    %cst_29 = arith.constant 0.000000e+00 : f32
    %76 = vector.shape_cast %21 : vector<1x32xi1> to vector<1x32xi1>
    %77 = vector.broadcast %76 : vector<1x32xi1> to vector<8x32xi1>
    %78 = vector.broadcast %cst_29 : f32 to vector<8x32xf32>
    %79 = arith.select %77, %75, %78 : vector<8x32xi1>, vector<8x32xf32>
    %80 = tpu.concatenate %61, %79 in 0 : vector<8x32xf32>, vector<8x32xf32> -> vector<16x32xf32>
    %cst_30 = arith.constant dense<0.000000e+00> : vector<8x32xf32>
    %81 = tpu.matmul %72, %80, %cst_30 {dimension_numbers = #tpu.dot_dimension_numbers<[1], [0], [0], [1], [0, 0, 1, 1], [], []>} : vector<8x16xf32>, vector<16x32xf32>, vector<8x32xf32> -> vector<8x32xf32>
    %c0_31 = arith.constant 0 : index
    %c0_32 = arith.constant 0 : index
    %82 = vector.load %arg7[%c0_31, %c0_32] : memref<8x1xf32, #tpu.memory_space<vmem>>, vector<8x1xf32>
    %c0_33 = arith.constant 0 : index
    %c0_34 = arith.constant 0 : index
    %83 = vector.load %arg8[%c0_33, %c0_34] : memref<8x1xf32, #tpu.memory_space<vmem>>, vector<8x1xf32>
    %cst_35 = arith.constant dense<0.000000e+00> : vector<8xf32>
    %84 = vector.multi_reduction <add>, %71, %cst_35 [1] : vector<8x32xf32> to vector<8xf32>
    %85 = vector.shape_cast %84 : vector<8xf32> to vector<8x1xf32>
    %cst_36 = arith.constant dense<0.000000e+00> : vector<8xf32>
    %86 = vector.multi_reduction <add>, %81, %cst_36 [1] : vector<8x32xf32> to vector<8xf32>
    %87 = vector.shape_cast %86 : vector<8xf32> to vector<8x1xf32>
    %88 = arith.addf %85, %87 : vector<8x1xf32>
    %cst_37 = arith.constant 6.400000e+01 : f32
    %89 = vector.broadcast %cst_37 : f32 to vector<8x1xf32>
    %90 = arith.divf %88, %89 : vector<8x1xf32>
    %91 = vector.broadcast %90 : vector<8x1xf32> to vector<8x32xf32>
    %92 = arith.subf %71, %91 : vector<8x32xf32>
    %93 = vector.broadcast %90 : vector<8x1xf32> to vector<8x32xf32>
    %94 = arith.subf %81, %93 : vector<8x32xf32>
    %95 = arith.mulf %92, %92 : vector<8x32xf32>
    %cst_38 = arith.constant dense<0.000000e+00> : vector<8xf32>
    %96 = vector.multi_reduction <add>, %95, %cst_38 [1] : vector<8x32xf32> to vector<8xf32>
    %97 = vector.shape_cast %96 : vector<8xf32> to vector<8x1xf32>
    %98 = arith.mulf %94, %94 : vector<8x32xf32>
    %cst_39 = arith.constant dense<0.000000e+00> : vector<8xf32>
    %99 = vector.multi_reduction <add>, %98, %cst_39 [1] : vector<8x32xf32> to vector<8xf32>
    %100 = vector.shape_cast %99 : vector<8xf32> to vector<8x1xf32>
    %101 = arith.addf %97, %100 : vector<8x1xf32>
    %cst_40 = arith.constant 6.400000e+01 : f32
    %102 = vector.broadcast %cst_40 : f32 to vector<8x1xf32>
    %103 = arith.divf %101, %102 : vector<8x1xf32>
    %cst_41 = arith.constant 9.99999974E-6 : f32
    %104 = vector.broadcast %cst_41 : f32 to vector<8x1xf32>
    %105 = arith.addf %103, %104 : vector<8x1xf32>
    %106 = math.rsqrt %105 : vector<8x1xf32>
    %107 = arith.mulf %106, %82 : vector<8x1xf32>
    %108 = vector.broadcast %107 : vector<8x1xf32> to vector<8x32xf32>
    %109 = arith.mulf %92, %108 : vector<8x32xf32>
    %110 = vector.broadcast %83 : vector<8x1xf32> to vector<8x32xf32>
    %111 = arith.addf %109, %110 : vector<8x32xf32>
    %cst_42 = arith.constant 0.000000e+00 : f32
    %112 = vector.broadcast %cst_42 : f32 to vector<8x32xf32>
    %113 = arith.maximumf %111, %112 : vector<8x32xf32>
    %114 = vector.broadcast %107 : vector<8x1xf32> to vector<8x32xf32>
    %115 = arith.mulf %94, %114 : vector<8x32xf32>
    %116 = vector.broadcast %83 : vector<8x1xf32> to vector<8x32xf32>
    %117 = arith.addf %115, %116 : vector<8x32xf32>
    %cst_43 = arith.constant 0.000000e+00 : f32
    %118 = vector.broadcast %cst_43 : f32 to vector<8x32xf32>
    %119 = arith.maximumf %117, %118 : vector<8x32xf32>
    %c0_44 = arith.constant 0 : index
    %c0_45 = arith.constant 0 : index
    %120 = vector.load %arg4[%c0_44, %c0_45] : memref<16x24xf32, #tpu.memory_space<vmem>>, vector<16x24xf32>
    %cst_46 = arith.constant 0.000000e+00 : f32
    %121 = vector.broadcast %cst_46 : f32 to vector<8x1xf32>
    %122 = vector.extract_strided_slice %119 {offsets = [0, 0], sizes = [8, 31], strides = [1, 1]} : vector<8x32xf32> to vector<8x31xf32>
    %123 = tpu.concatenate %121, %122 in 1 : vector<8x1xf32>, vector<8x31xf32> -> vector<8x32xf32>
    %cst_47 = arith.constant 0.000000e+00 : f32
    %124 = vector.shape_cast %19 : vector<1x32xi1> to vector<1x32xi1>
    %125 = vector.broadcast %124 : vector<1x32xi1> to vector<8x32xi1>
    %126 = vector.broadcast %cst_47 : f32 to vector<8x32xf32>
    %127 = arith.select %125, %123, %126 : vector<8x32xi1>, vector<8x32xf32>
    %128 = tpu.concatenate %127, %113, %119 in 0 : vector<8x32xf32>, vector<8x32xf32>, vector<8x32xf32> -> vector<24x32xf32>
    %cst_48 = arith.constant dense<0.000000e+00> : vector<16x32xf32>
    %129 = tpu.matmul %120, %128, %cst_48 {dimension_numbers = #tpu.dot_dimension_numbers<[1], [0], [0], [1], [0, 0, 1, 1], [], []>} : vector<16x24xf32>, vector<24x32xf32>, vector<16x32xf32> -> vector<16x32xf32>
    %c0_49 = arith.constant 0 : index
    %c0_50 = arith.constant 0 : index
    %130 = vector.load %arg4[%c0_49, %c0_50] : memref<16x24xf32, #tpu.memory_space<vmem>>, vector<16x24xf32>
    %131 = vector.extract_strided_slice %113 {offsets = [0, 1], sizes = [8, 31], strides = [1, 1]} : vector<8x32xf32> to vector<8x31xf32>
    %cst_51 = arith.constant 0.000000e+00 : f32
    %132 = vector.broadcast %cst_51 : f32 to vector<8x1xf32>
    %133 = tpu.concatenate %131, %132 in 1 : vector<8x31xf32>, vector<8x1xf32> -> vector<8x32xf32>
    %cst_52 = arith.constant 0.000000e+00 : f32
    %134 = vector.shape_cast %21 : vector<1x32xi1> to vector<1x32xi1>
    %135 = vector.broadcast %134 : vector<1x32xi1> to vector<8x32xi1>
    %136 = vector.broadcast %cst_52 : f32 to vector<8x32xf32>
    %137 = arith.select %135, %133, %136 : vector<8x32xi1>, vector<8x32xf32>
    %138 = tpu.concatenate %113, %119, %137 in 0 : vector<8x32xf32>, vector<8x32xf32>, vector<8x32xf32> -> vector<24x32xf32>
    %cst_53 = arith.constant dense<0.000000e+00> : vector<16x32xf32>
    %139 = tpu.matmul %130, %138, %cst_53 {dimension_numbers = #tpu.dot_dimension_numbers<[1], [0], [0], [1], [0, 0, 1, 1], [], []>} : vector<16x24xf32>, vector<24x32xf32>, vector<16x32xf32> -> vector<16x32xf32>
    %c0_54 = arith.constant 0 : index
    %c0_55 = arith.constant 0 : index
    %140 = vector.load %arg9[%c0_54, %c0_55] : memref<16x1xf32, #tpu.memory_space<vmem>>, vector<16x1xf32>
    %c0_56 = arith.constant 0 : index
    %c0_57 = arith.constant 0 : index
    %141 = vector.load %arg10[%c0_56, %c0_57] : memref<16x1xf32, #tpu.memory_space<vmem>>, vector<16x1xf32>
    %cst_58 = arith.constant dense<0.000000e+00> : vector<16xf32>
    %142 = vector.multi_reduction <add>, %129, %cst_58 [1] : vector<16x32xf32> to vector<16xf32>
    %143 = vector.shape_cast %142 : vector<16xf32> to vector<16x1xf32>
    %cst_59 = arith.constant dense<0.000000e+00> : vector<16xf32>
    %144 = vector.multi_reduction <add>, %139, %cst_59 [1] : vector<16x32xf32> to vector<16xf32>
    %145 = vector.shape_cast %144 : vector<16xf32> to vector<16x1xf32>
    %146 = arith.addf %143, %145 : vector<16x1xf32>
    %cst_60 = arith.constant 6.400000e+01 : f32
    %147 = vector.broadcast %cst_60 : f32 to vector<16x1xf32>
    %148 = arith.divf %146, %147 : vector<16x1xf32>
    %149 = vector.broadcast %148 : vector<16x1xf32> to vector<16x32xf32>
    %150 = arith.subf %129, %149 : vector<16x32xf32>
    %151 = vector.broadcast %148 : vector<16x1xf32> to vector<16x32xf32>
    %152 = arith.subf %139, %151 : vector<16x32xf32>
    %153 = arith.mulf %150, %150 : vector<16x32xf32>
    %cst_61 = arith.constant dense<0.000000e+00> : vector<16xf32>
    %154 = vector.multi_reduction <add>, %153, %cst_61 [1] : vector<16x32xf32> to vector<16xf32>
    %155 = vector.shape_cast %154 : vector<16xf32> to vector<16x1xf32>
    %156 = arith.mulf %152, %152 : vector<16x32xf32>
    %cst_62 = arith.constant dense<0.000000e+00> : vector<16xf32>
    %157 = vector.multi_reduction <add>, %156, %cst_62 [1] : vector<16x32xf32> to vector<16xf32>
    %158 = vector.shape_cast %157 : vector<16xf32> to vector<16x1xf32>
    %159 = arith.addf %155, %158 : vector<16x1xf32>
    %cst_63 = arith.constant 6.400000e+01 : f32
    %160 = vector.broadcast %cst_63 : f32 to vector<16x1xf32>
    %161 = arith.divf %159, %160 : vector<16x1xf32>
    %cst_64 = arith.constant 9.99999974E-6 : f32
    %162 = vector.broadcast %cst_64 : f32 to vector<16x1xf32>
    %163 = arith.addf %161, %162 : vector<16x1xf32>
    %164 = math.rsqrt %163 : vector<16x1xf32>
    %165 = arith.mulf %164, %140 : vector<16x1xf32>
    %166 = vector.broadcast %165 : vector<16x1xf32> to vector<16x32xf32>
    %167 = arith.mulf %150, %166 : vector<16x32xf32>
    %168 = vector.broadcast %141 : vector<16x1xf32> to vector<16x32xf32>
    %169 = arith.addf %167, %168 : vector<16x32xf32>
    %cst_65 = arith.constant 0.000000e+00 : f32
    %170 = vector.broadcast %cst_65 : f32 to vector<16x32xf32>
    %171 = arith.maximumf %169, %170 : vector<16x32xf32>
    %172 = vector.broadcast %165 : vector<16x1xf32> to vector<16x32xf32>
    %173 = arith.mulf %152, %172 : vector<16x32xf32>
    %174 = vector.broadcast %141 : vector<16x1xf32> to vector<16x32xf32>
    %175 = arith.addf %173, %174 : vector<16x32xf32>
    %cst_66 = arith.constant 0.000000e+00 : f32
    %176 = vector.broadcast %cst_66 : f32 to vector<16x32xf32>
    %177 = arith.maximumf %175, %176 : vector<16x32xf32>
    %c0_67 = arith.constant 0 : index
    %c0_68 = arith.constant 0 : index
    %178 = vector.load %arg11[%c0_67, %c0_68] : memref<16x32xf32, #tpu.memory_space<vmem>>, vector<16x32xf32>
    tpu.vector_store %arg11[%c0_67, %c0_68], %171 {strides = array<i32>} : memref<16x32xf32, #tpu.memory_space<vmem>>, vector<16x32xf32>,
    %c0_69 = arith.constant 0 : index
    %c0_70 = arith.constant 0 : index
    %179 = vector.load %arg12[%c0_69, %c0_70] : memref<16x32xf32, #tpu.memory_space<vmem>>, vector<16x32xf32>
    tpu.vector_store %arg12[%c0_69, %c0_70], %177 {strides = array<i32>} : memref<16x32xf32, #tpu.memory_space<vmem>>, vector<16x32xf32>,
    return
  }
}

</mosaic_0001>

<bundles_post_ra>
// kernel: decoder_block.1
= control target key start
LH: loop header
LB: loop body
LE: loop exit
PB: predicated region body
PF: predicated region fallthrough
CT: control target
= control target key end

     0   :  { %v866_v3 = vmov 0.0|0.0   ;;  %s867_s29 = smov 1   ;;  %s868_s30 = smov 127   ;;  %vm869_vm0 = vmmov 0   ;;  %v870_v9 = vmov 0.0   ;;  %v44_v10 = vlaneseq  ;;  %s1084_s0 = inlined_call_operand.vmem [shape: f32[32,32], index: 0, kind: input, shape index: {}]   ;;  %s1085_s1 = inlined_call_operand.vmem [shape: f32[8,96], index: 1, kind: input, shape index: {}]   ;;  %s1086_s6 = inlined_call_operand.vmem [shape: f32[8,1], index: 6, kind: input, shape index: {}]   ;;  %s1087_s5 = inlined_call_operand.vmem [shape: f32[8,1], index: 5, kind: input, shape index: {}]   ;;  %s1088_s2 = inlined_call_operand.vmem [shape: f32[8,16], index: 2, kind: input, shape index: {}]   ;;  %s1089_s3 = inlined_call_operand.vmem [shape: f32[8,16], index: 3, kind: input, shape index: {}]   ;;  %s1090_s8 = inlined_call_operand.vmem [shape: f32[8,1], index: 8, kind: input, shape index: {}]   ;;  %s1091_s7 = inlined_call_operand.vmem [shape: f32[8,1], index: 7, kind: input, shape index: {}]   ;;  %s1092_s4 = inlined_call_operand.vmem [shape: f32[16,24], index: 4, kind: input, shape index: {}]   ;;  %s1093_s10 = inlined_call_operand.vmem [shape: f32[16,1], index: 10, kind: input, shape index: {}]   ;;  %s1094_s9 = inlined_call_operand.vmem [shape: f32[16,1], index: 9, kind: input, shape index: {}]   ;;  %s1095_s11 = inlined_call_operand.vmem [shape: f32[16,32], index: 11, kind: output, shape index: {0}]   ;;  %s1096_s12 = inlined_call_operand.vmem [shape: f32[16,32], index: 12, kind: output, shape index: {1}]  }
   0x1   :  { %v40_v0 = vld [vmem:[%s1084_s0] sm:$0xff]  ;;  %v41_v1 = vld [vmem:[%s1084_s0 + $0x8] sm:$0xff]  ;;  %v42_v2 = vld [vmem:[%s1084_s0 + $0x10] sm:$0xff]  ;;  %789 = vmatprep.subr.bf16.mxu0 %v866_v3  ;;  %811 = vmatprep.subr.bf16.mxu1 %v866_v3  ;;  %vm76_vm1 = vcmask 7168   ;;  %vm99_vm4 = vcmask 252928   ;;  %vm111_vm7 = vcmask 785408  }
   0x2   :  { %v836_v4 = vpack.i.bf16 %v41_v1, %v40_v0  ;;  %v43_v5 = vld [vmem:[%s1084_s0 + $0x18] sm:$0xff]  ;;  %v798_v6 = vpack.c.bf16 %v41_v1, %v40_v0  ;;  %754 = vmatprep.mubr.msk.f32.mxu0 %vm869_vm0, %v870_v9  ;;  %761 = vmatprep.mubr.msk.f32.mxu1 %vm869_vm0, %v870_v9  ;;  %v45_v11 = vand.u32 127, %v44_v10  ;;  %v110_v39 = vld [vmem:[%s1085_s1] sm:$0xff]  ;;  %vm187_vm8 = vcmask 261120  }
   0x3   :  { %v841_v7 = vpack.i.bf16 %v43_v5, %v42_v2  ;;  %v801_v8 = vpack.c.bf16 %v43_v5, %v42_v2  ;;  %v871_v48 = vmov 0   ;;  %v186_v49 = vld [vmem:[%s1086_s6] sm:$0xff]  ;;  %vm872_vm9 = vmmov 1  }
   0x4   :  { %837 = vrot.lane.b32.xlu0 %v836_v4, %s867_s29  ;;  %847 = vrot.lane.b32.xlu1 %v836_v4, %s868_s30  ;;  %v50_v12 = vand.u32 15, %v45_v11  ;;  %v185_v53 = vld [vmem:[%s1087_s5] sm:$0xff]  ;;  %vm222_vm11 = vcmask 130048   ;;  %vm425_vm13 = vcmask 195584  }
   0x5   :  { %856 = vset.pattern.permute.xlu0 %v871_v48  ;;  %857 = vset.pattern.permute.xlu1 %v871_v48  ;;  %v215_v1 = vld [vmem:[%s1088_s2] sm:$0xff] }
   0x6   :  { %vm960_vm2 = vcmp.ne.s32.totalorder %v50_v12, 0  ;;  %vm976_vm5 = vcmp.ne.s32.totalorder %v50_v12, 15  ;;  %v296_v5 = vld [vmem:[%s1089_s3] sm:$0xff] }
   0x7   :  { %vm791_vm3 = vmpackc.low %vm960_vm2, %vm960_vm2  ;;  %v376_v12 = vld [vmem:[%s1090_s8] sm:$0xff] }
   0x8   :  { %842 = vrot.lane.b32.xlu0 %v841_v7, %s867_s29  ;;  %852 = vrot.lane.b32.xlu1 %v841_v7, %s868_s30  ;;  %vm805_vm6 = vmpackc.low %vm976_vm5, %vm976_vm5 }
   0x9   :  { %vm813_vm10 = vmpackc.low %vm960_vm2, %vm872_vm9 }
   0xa   :  { %vm817_vm12 = vmpackc.low %vm976_vm5, %vm872_vm9 }
   0xb   :  { %vm820_vm14 = vmpackc.low %vm872_vm9, %vm960_vm2 }
  0x76   :  { %v838_v13 = vpop.permute.xlu0 %837  ;;  %v848_v23 = vpop.permute.xlu1 %847 }
  0x77   :  { %v840_v15 = vunpack.i.h.bf16 %v838_v13  ;;  %v839_v16 = vunpack.i.l.bf16 %v838_v13  ;;  %v850_v27 = vunpack.i.h.bf16 %v848_v23  ;;  %v849_v28 = vunpack.i.l.bf16 %v848_v23 }
  0x79   :  { %v78_v17 = vsel %vm76_vm1, 0.0, %v840_v15  ;;  %v77_v18 = vsel %vm76_vm1, 0.0, %v839_v16  ;;  %v101_v30 = vsel %vm99_vm4, %v850_v27, 0.0  ;;  %v100_v31 = vsel %vm99_vm4, %v849_v28, 0.0  ;;  %v375_v28 = vld [vmem:[%s1091_s7] sm:$0xff] }
  0x7a   :  { %v843_v19 = vpop.permute.xlu0 %842  ;;  %v790_v20 = vpack.c.bf16 %v78_v17, %v77_v18  ;;  %v853_v29 = vpop.permute.xlu1 %852  ;;  %v804_v35 = vpack.c.bf16 %v101_v30, %v100_v31 }
  0x7b   :  { %v845_v21 = vunpack.i.h.bf16 %v843_v19  ;;  %v844_v22 = vunpack.i.l.bf16 %v843_v19  ;;  %v855_v32 = vunpack.i.h.bf16 %v853_v29  ;;  %v854_v33 = vunpack.i.l.bf16 %v853_v29 }
  0x7c   :  { %792 = vmatpush3.bf16.msk.msra.mxu0 %vm791_vm3, %v790_v20 }
  0x7d   :  { %v80_v24 = vsel %vm76_vm1, 0.0, %v845_v21  ;;  %v79_v25 = vsel %vm76_vm1, 0.0, %v844_v22  ;;  %793 = vmatprep.subr.bf16.mxu0 %v866_v3  ;;  %v103_v36 = vsel %vm99_vm4, %v855_v32, 0.0  ;;  %v102_v37 = vsel %vm99_vm4, %v854_v33, 0.0 }
  0x7e   :  { %v794_v26 = vpack.c.bf16 %v80_v24, %v79_v25  ;;  %v808_v38 = vpack.c.bf16 %v103_v36, %v102_v37 }
  0x80   :  { %796 = vmatpush3.bf16.msk.msra.mxu0 %vm791_vm3, %v794_v26 }
  0x81   :  { %797 = vmatprep.subr.bf16.mxu0 %v866_v3 }
  0x84   :  { %799 = vmatpush3.bf16.msra.mxu0 %v798_v6 }
  0x85   :  { %800 = vmatprep.subr.bf16.mxu0 %v866_v3 }
  0x88   :  { %802 = vmatpush3.bf16.msra.mxu0 %v801_v8 }
  0x89   :  { %803 = vmatprep.subr.bf16.mxu0 %v866_v3 }
  0x8c   :  { %806 = vmatpush3.bf16.msk.msra.mxu0 %vm805_vm6, %v804_v35  ;;  %v417_v35 = vld [vmem:[%s1092_s4] sm:$0xff] }
  0x8d   :  { %807 = vmatprep.subr.bf16.mxu0 %v866_v3 }
  0x90   :  { %810 = vmatpush3.bf16.msk.msra.mxu0 %vm805_vm6, %v808_v38 }
  0x93   :  { %755 = vmatmul.mubr.msk.f32.vlgmr.msra.gmra.mrb[0].mxu0 %vm111_vm7, %v110_v39 }
 0x166   :  { %v181_v40 = vpop.f32.mrb[0].mxu0 }
 0x167   :  { %v756_v41 = vpop.f32.mrb[1].mxu0  ;;  %v188_v42 = vsel %vm187_vm8, %v181_v40, 0.0 }
 0x168   :  { %189 = vadd.xlane.f32.xlu0 %v188_v42 }
 0x1f5   :  { %v190_v43 = vpop.xlane.xlu0 %189 }
 0x1f6   :  { %v192_v44 = vmul.f32 0.03125, %v190_v43 }
 0x1f8   :  { %v193_v45 = vsub.f32 %v181_v40, %v192_v44  ;;  %v418_v44 = vld [vmem:[%s1092_s4 + $0x8] sm:$0xff] }
 0x1fa   :  { %v194_v46 = vmul.f32 %v193_v45, %v193_v45 }
 0x1fc   :  { %v195_v47 = vsel %vm187_vm8, %v194_v46, 0.0 }
 0x1fd   :  { %196 = vadd.xlane.f32.xlu1 %v195_v47 }
 0x20e   :  { %210 = vperm.xlu1 %857, %v186_v49  }
 0x28a   :  { %v197_v50 = vpop.xlane.xlu1 %196 }
 0x28b   :  { %v198_v51 = vmul.f32 0.03125, %v197_v50 }
 0x28d   :  { %v199_v52 = vadd.f32 1e-05, %v198_v51 }
 0x28e   :  { %v211_v57 = vpop.permute.xlu1 %210 }
 0x28f   :  { %858 = vrsqrt.f32 %v199_v52 }
 0x299   :  { %v859_v54 = vpop.eup %858 }
 0x29a   :  { %v201_v55 = vmul.f32 %v859_v54, %v185_v53 }
 0x29c   :  { %204 = vperm.xlu0 %856, %v201_v55  }
 0x31b   :  { %v205_v56 = vpop.permute.xlu0 %204 }
 0x31c   :  { %v207_v58 = vmul.f32 %v205_v56, %v193_v45 }
 0x31e   :  { %v213_v59 = vadd.f32 %v211_v57, %v207_v58 }
 0x320   :  { %v214_v60 = vmax.f32 %v213_v59, 0.0 }
 0x322   :  { %217 = vrot.lane.b32.xlu1 %v214_v60, %s867_s29 }
 0x326   :  { %297 = vrot.lane.b32.xlu1 %v214_v60, %s868_s30 }
 0x394   :  { %v218_v61 = vpop.permute.xlu1 %217 }
 0x395   :  { %v220_v62 = vsel %vm76_vm1, 0.0, %v218_v61 }
 0x396   :  { %v812_v63 = vpack.c.bf16 %v220_v62, %v214_v60 }
 0x398   :  { %814 = vmatpush3.bf16.msk.msra.mxu1 %vm813_vm10, %v812_v63  ;;  %v298_v0 = vpop.permute.xlu1 %297 }
 0x399   :  { %v300_v2 = vsel %vm99_vm4, %v298_v0, 0.0  ;;  %815 = vmatprep.subr.bf16.mxu1 %v866_v3 }
 0x39a   :  { %v816_v4 = vpack.c.bf16 %v300_v2, %v214_v60 }
 0x39b   :  { %762 = vmatmul.mubr.msk.f32.vlgmr.msra.gmra.mrb[0].mxu1 %vm222_vm11, %v215_v1 }
 0x39c   :  { %818 = vmatpush3.bf16.msk.msra.mxu1 %vm817_vm12, %v816_v4  ;;  %768 = vmatprep.mubr.msk.f32.mxu1 %vm869_vm0, %v870_v9 }
 0x39f   :  { %769 = vmatmul.mubr.msk.f32.vlgmr.msra.gmra.mrb[2].mxu1 %vm222_vm11, %v296_v5 }
 0x3a0   :  { %777 = vmatprep.mubr.msk.f32.mxu1 %vm425_vm13, %v417_v35 }
 0x46e   :  { %v292_v6 = vpop.f32.mrb[0].mxu1 }
 0x46f   :  { %v763_v7 = vpop.f32.mrb[1].mxu1  ;;  %v377_v8 = vsel %vm187_vm8, %v292_v6, 0.0 }
 0x470   :  { %378 = vadd.xlane.f32.xlu1 %v377_v8 }
 0x472   :  { %v371_v3 = vpop.f32.mrb[2].mxu1 }
 0x473   :  { %v770_v10 = vpop.f32.mrb[3].mxu1  ;;  %v380_v11 = vsel %vm187_vm8, %v371_v3, 0.0 }
 0x474   :  { %381 = vadd.xlane.f32.xlu0 %v380_v11  ;;  %v590_v11 = vld [vmem:[%s1093_s10] sm:$0xff] }
 0x48a   :  { %409 = vperm.xlu0 %856, %v376_v12  }
 0x4fd   :  { %v379_v9 = vpop.xlane.xlu1 %378 }
 0x501   :  { %v382_v13 = vpop.xlane.xlu0 %381 }
 0x502   :  { %v383_v15 = vadd.f32 %v382_v13, %v379_v9 }
 0x504   :  { %v385_v16 = vmul.f32 0.015625, %v383_v15 }
 0x506   :  { %v386_v17 = vsub.f32 %v292_v6, %v385_v16  ;;  %v387_v18 = vsub.f32 %v371_v3, %v385_v16 }
 0x508   :  { %v388_v19 = vmul.f32 %v386_v17, %v386_v17  ;;  %v392_v21 = vmul.f32 %v387_v18, %v387_v18 }
 0x509   :  { %v410_v36 = vpop.permute.xlu0 %409 }
 0x50a   :  { %v389_v20 = vsel %vm187_vm8, %v388_v19, 0.0  ;;  %v393_v22 = vsel %vm187_vm8, %v392_v21, 0.0 }
 0x50b   :  { %390 = vadd.xlane.f32.xlu1 %v389_v20 }
 0x50f   :  { %394 = vadd.xlane.f32.xlu1 %v393_v22  ;;  %v588_v22 = vld [vmem:[%s1094_s9] sm:$0xff] }
 0x598   :  { %v391_v23 = vpop.xlane.xlu1 %390 }
 0x59c   :  { %v395_v24 = vpop.xlane.xlu1 %394 }
 0x59d   :  { %v396_v25 = vadd.f32 %v395_v24, %v391_v23 }
 0x59f   :  { %v397_v26 = vmul.f32 0.015625, %v396_v25  ;;  %v589_v25 = vld [vmem:[%s1094_s9 + $0x8] sm:$0xff] }
 0x5a1   :  { %v398_v27 = vadd.f32 1e-05, %v397_v26 }
 0x5a3   :  { %860 = vrsqrt.f32 %v398_v27  ;;  %v591_v27 = vld [vmem:[%s1093_s10 + $0x8] sm:$0xff] }
 0x5ad   :  { %v861_v29 = vpop.eup %860 }
 0x5ae   :  { %v400_v30 = vmul.f32 %v861_v29, %v375_v28 }
 0x5b0   :  { %403 = vperm.xlu1 %857, %v400_v30  }
 0x62f   :  { %v404_v31 = vpop.permute.xlu1 %403 }
 0x630   :  { %v406_v32 = vmul.f32 %v404_v31, %v386_v17  ;;  %v414_v33 = vmul.f32 %v404_v31, %v387_v18 }
 0x632   :  { %v415_v37 = vadd.f32 %v414_v33, %v410_v36  ;;  %v412_v38 = vadd.f32 %v410_v36, %v406_v32 }
 0x634   :  { %v416_v39 = vmax.f32 %v415_v37, 0.0  ;;  %v413_v40 = vmax.f32 %v412_v38, 0.0 }
 0x636   :  { %420 = vrot.lane.b32.xlu1 %v416_v39, %s867_s29  ;;  %v825_v46 = vpack.c.bf16 %v416_v39, %v413_v40 }
 0x63a   :  { %508 = vrot.lane.b32.xlu1 %v413_v40, %s868_s30 }
 0x6a8   :  { %v421_v41 = vpop.permute.xlu1 %420 }
 0x6a9   :  { %v423_v42 = vsel %vm76_vm1, 0.0, %v421_v41 }
 0x6aa   :  { %v819_v43 = vpack.c.bf16 %v413_v40, %v423_v42 }
 0x6ac   :  { %821 = vmatprep.subr.msk.bf16.mxu1 %vm820_vm14, %v819_v43  ;;  %v509_v45 = vpop.permute.xlu1 %508 }
 0x6ad   :  { %824 = vmatpush3.bf16.msk.msra.mxu1 %vm820_vm14, %v819_v43  ;;  %v511_v47 = vsel %vm99_vm4, %v509_v45, 0.0 }
 0x6ae   :  { %775 = vmatprep.subr.mxu1 %v416_v39 }
 0x6b1   :  { %776 = vmatpush3.msra.mxu1 %v416_v39 }
 0x6b2   :  { %778 = vmatmul.mubr.msk.f32.vlgmr.msra.gmra.mrb[4].mxu1 %vm425_vm13, %v418_v44  ;;  %826 = vmatprep.subr.bf16.mxu1 %v825_v46 }
 0x6b3   :  { %828 = vmatpush3.bf16.msra.mxu1 %v825_v46  ;;  %786 = vmatprep.mubr.msk.f32.mxu1 %vm425_vm13, %v417_v35 }
 0x6b4   :  { %784 = vmatprep.subr.msk.mxu1 %vm976_vm5, %v511_v47 }
 0x6b7   :  { %785 = vmatpush3.msk.msra.mxu1 %vm976_vm5, %v511_v47 }
 0x6b8   :  { %787 = vmatmul.mubr.msk.f32.vlgmr.msra.gmra.mrb[6].mxu1 %vm425_vm13, %v418_v44 }
 0x785   :  { %v779_v14 = vpop.f32.mrb[4].mxu1 }
 0x786   :  { %v498_v48 = vpop.f32.mrb[5].mxu1  ;;  %v595_v49 = vsel %vm187_vm8, %v779_v14, 0.0 }
 0x787   :  { %596 = vadd.xlane.f32.xlu1 %v595_v49  ;;  %v592_v50 = vsel %vm187_vm8, %v498_v48, 0.0 }
 0x788   :  { %593 = vadd.xlane.f32.xlu0 %v592_v50 }
 0x78b   :  { %v788_v51 = vpop.f32.mrb[6].mxu1 }
 0x78c   :  { %v579_v52 = vpop.f32.mrb[7].mxu1  ;;  %v601_v54 = vsel %vm187_vm8, %v788_v51, 0.0 }
 0x78d   :  { %v598_v53 = vsel %vm187_vm8, %v579_v52, 0.0 }
 0x78e   :  { %599 = vadd.xlane.f32.xlu0 %v598_v53 }
 0x792   :  { %602 = vadd.xlane.f32.xlu0 %v601_v54 }
 0x814   :  { %v597_v58 = vpop.xlane.xlu1 %596 }
 0x815   :  { %v594_v34 = vpop.xlane.xlu0 %593 }
 0x81b   :  { %v600_v55 = vpop.xlane.xlu0 %599 }
 0x81c   :  { %v604_v56 = vadd.f32 %v600_v55, %v594_v34 }
 0x81e   :  { %v606_v57 = vmul.f32 0.015625, %v604_v56 }
 0x81f   :  { %v603_v59 = vpop.xlane.xlu0 %602 }
 0x820   :  { %v608_v60 = vsub.f32 %v498_v48, %v606_v57  ;;  %v610_v61 = vsub.f32 %v579_v52, %v606_v57  ;;  %v605_v62 = vadd.f32 %v603_v59, %v597_v58 }
 0x822   :  { %v607_v63 = vmul.f32 0.015625, %v605_v62  ;;  %v612_v0 = vmul.f32 %v608_v60, %v608_v60  ;;  %v620_v5 = vmul.f32 %v610_v61, %v610_v61 }
 0x824   :  { %v609_v1 = vsub.f32 %v779_v14, %v607_v63  ;;  %v611_v2 = vsub.f32 %v788_v51, %v607_v63  ;;  %v614_v4 = vsel %vm187_vm8, %v612_v0, 0.0  ;;  %v622_v7 = vsel %vm187_vm8, %v620_v5, 0.0 }
 0x825   :  { %615 = vadd.xlane.f32.xlu1 %v614_v4 }
 0x826   :  { %v613_v6 = vmul.f32 %v609_v1, %v609_v1  ;;  %v621_v3 = vmul.f32 %v611_v2, %v611_v2 }
 0x828   :  { %v617_v8 = vsel %vm187_vm8, %v613_v6, 0.0  ;;  %v625_v10 = vsel %vm187_vm8, %v621_v3, 0.0 }
 0x829   :  { %623 = vadd.xlane.f32.xlu1 %v622_v7  ;;  %618 = vadd.xlane.f32.xlu0 %v617_v8 }
 0x82d   :  { %626 = vadd.xlane.f32.xlu0 %v625_v10 }
 0x83a   :  { %652 = vperm.xlu1 %857, %v590_v11  }
 0x8b2   :  { %v616_v12 = vpop.xlane.xlu1 %615 }
 0x8b6   :  { %v624_v9 = vpop.xlane.xlu1 %623  ;;  %v619_v13 = vpop.xlane.xlu0 %618 }
 0x8b7   :  { %v628_v15 = vadd.f32 %v624_v9, %v616_v12 }
 0x8b9   :  { %v630_v16 = vmul.f32 0.015625, %v628_v15 }
 0x8ba   :  { %v627_v17 = vpop.xlane.xlu0 %626  ;;  %v653_v29 = vpop.permute.xlu1 %652 }
 0x8bb   :  { %v632_v18 = vadd.f32 1e-05, %v630_v16  ;;  %v629_v19 = vadd.f32 %v627_v17, %v619_v13 }
 0x8bd   :  { %862 = vrsqrt.f32 %v632_v18  ;;  %v631_v20 = vmul.f32 0.015625, %v629_v19 }
 0x8bf   :  { %v633_v21 = vadd.f32 1e-05, %v631_v20 }
 0x8c1   :  { %864 = vrsqrt.f32 %v633_v21 }
 0x8c7   :  { %v863_v23 = vpop.eup %862 }
 0x8c8   :  { %v636_v24 = vmul.f32 %v863_v23, %v588_v22 }
 0x8ca   :  { %640 = vperm.xlu1 %857, %v636_v24  }
 0x8cb   :  { %v865_v26 = vpop.eup %864 }
 0x8cc   :  { %v637_v28 = vmul.f32 %v865_v26, %v589_v25 }
 0x8ce   :  { %657 = vperm.xlu1 %857, %v591_v27   ;;  %645 = vperm.xlu0 %856, %v637_v28  }
 0x949   :  { %v641_v30 = vpop.permute.xlu1 %640 }
 0x94a   :  { %v648_v31 = vmul.f32 %v641_v30, %v608_v60  ;;  %v664_v32 = vmul.f32 %v641_v30, %v610_v61 }
 0x94c   :  { %v660_v33 = vadd.f32 %v653_v29, %v648_v31  ;;  %v666_v35 = vadd.f32 %v664_v32, %v653_v29 }
 0x94d   :  { %v646_v36 = vpop.permute.xlu0 %645  ;;  %v658_v41 = vpop.permute.xlu1 %657 }
 0x94e   :  { %v662_v37 = vmax.f32 %v660_v33, 0.0  ;;  %v668_v38 = vmax.f32 %v666_v35, 0.0  ;;  %v649_v39 = vmul.f32 %v646_v36, %v609_v1  ;;  %v665_v40 = vmul.f32 %v646_v36, %v611_v2 }
 0x950   :  { %670 = vst.msk [vmem:[%s1095_s11] sm:$0xff] %vm187_vm8, %v662_v37  ;;  %672 = vst.msk [vmem:[%s1096_s12] sm:$0xff] %vm187_vm8, %v668_v38  ;;  %v661_v42 = vadd.f32 %v658_v41, %v649_v39  ;;  %v667_v43 = vadd.f32 %v665_v40, %v658_v41 }
 0x952   :  { %v663_v44 = vmax.f32 %v661_v42, 0.0  ;;  %v669_v45 = vmax.f32 %v667_v43, 0.0 }
 0x954   :  { %671 = vst.msk [vmem:[%s1095_s11 + $0x8] sm:$0xff] %vm187_vm8, %v663_v44  ;;  %673 = vst.msk [vmem:[%s1096_s12 + $0x8] sm:$0xff] %vm187_vm8, %v669_v45 }

</bundles_post_ra>
